<compile_context>
chip_gen: v7x
topology: tpu7x:2x2x1
jax: 0.10.0
libtpu: 0.0.40
codegen_flags: <defaults>
</compile_context>

<pallas_src>
import functools

import jax
import jax.numpy as jnp
from jax.experimental import pallas as pl
from jax.experimental.pallas import tpu as pltpu


def _channel_attention_kernel(x_ref, w1_ref, b1_ref, w2_ref, b2_ref, o_ref,
                              *, inv_hw):
    # x_ref: (TB, C, HW) in native dtype
    # w1: (C, Cr)  b1: (1, Cr)  w2: (Cr, C)  b2: (1, C)
    x = x_ref[...]

    # --- global pooling over the spatial (lane) axis ---
    avg = jnp.sum(x, axis=-1, dtype=jnp.float32) * inv_hw        # (TB, C) f32
    mx = jnp.max(x, axis=-1).astype(jnp.float32)                 # (TB, C) f32

    # --- shared MLP on both pooled vectors (tiny matmuls; MXU is irrelevant,
    #     the kernel is HBM-bound) ---
    w1 = w1_ref[...].astype(jnp.float32)
    b1 = b1_ref[...].astype(jnp.float32)
    w2 = w2_ref[...].astype(jnp.float32)
    b2 = b2_ref[...].astype(jnp.float32)

    h_avg = jnp.maximum(jnp.dot(avg, w1, preferred_element_type=jnp.float32) + b1, 0.0)
    h_max = jnp.maximum(jnp.dot(mx, w1, preferred_element_type=jnp.float32) + b1, 0.0)
    # MLP(avg) + MLP(mx) = (h_avg + h_max) @ W2 + 2*b2
    out = jnp.dot(h_avg + h_max, w2, preferred_element_type=jnp.float32) + 2.0 * b2
    sig = jax.nn.sigmoid(out)                                    # (TB, C) f32

    # --- scale: multiply in f32, cast only the product ---
    o_ref[...] = (x.astype(jnp.float32) * sig[:, :, None]).astype(o_ref.dtype)


def _vmem_capacity_bytes():
    try:
        return int(pltpu.get_tpu_info().vmem_capacity_bytes)
    except Exception:
        return 64 * 1024 * 1024  # conservative (v7x per-TC) fallback


@jax.jit
def channel_attention(x, w1, b1, w2, b2):
    """x: (B, C, H, W); weights as produced by init_params (in, out) layout."""
    B, C, H, W = x.shape
    HW = H * W
    Cr = w1.shape[1]
    dtype_bytes = jnp.dtype(x.dtype).itemsize

    x_flat = x.reshape(B, C, HW)

    # --- batch-tile selection: target ~2 MiB x blocks, let grid_b grow ---
    bytes_per_b = C * HW * dtype_bytes
    target_block = 2 * 1024 * 1024
    max_tb = max(1, target_block // max(1, bytes_per_b))
    max_tb = min(max_tb, B)
    if B >= 2:
        max_tb = min(max_tb, B // 2)          # keep grid_b >= 2 (v7x: 2 TCs)
    divisors = [d for d in range(1, B + 1) if B % d == 0 and d <= max_tb]
    even_divs = [d for d in divisors if (B // d) % 2 == 0]
    if even_divs:
        tb = max(even_divs)                   # prefer an even grid for megacore
    elif divisors:
        tb = max(divisors)
    else:
        tb = 1
    grid_b = B // tb

    # --- generation-aware VMEM limit ---
    vmem_cap = _vmem_capacity_bytes()
    cap_limit = (3 * vmem_cap) // 4           # ~48 MiB on v7x, ~96 MiB on v5e/v6e
    block_bytes = tb * C * HW * dtype_bytes
    block_f32_bytes = tb * C * HW * 4
    weight_bytes = 4 * (C * Cr + Cr + Cr * C + C)
    live_bytes = (4 * block_bytes             # x + y blocks, double-buffered
                  + 2 * block_f32_bytes       # f32 product / elementwise temps
                  + 4 * weight_bytes)         # weights (double-buffered, f32)
    vmem_limit = int(min(cap_limit, max(2 * live_bytes, 16 * 1024 * 1024)))

    kernel = functools.partial(_channel_attention_kernel, inv_hw=1.0 / float(HW))

    cost = pl.CostEstimate(
        flops=3 * B * C * HW + 4 * B * C * Cr + 2 * B * Cr * C,
        transcendentals=B * C,                # sigmoid
        bytes_accessed=2 * B * C * HW * dtype_bytes,
    )

    out_flat = pl.pallas_call(
        kernel,
        out_shape=jax.ShapeDtypeStruct((B, C, HW), x.dtype),
        grid_spec=pltpu.PrefetchScalarGridSpec(
            num_scalar_prefetch=0,
            grid=(grid_b,),
            in_specs=[
                pl.BlockSpec((tb, C, HW), lambda b: (b, 0, 0)),
                pl.BlockSpec((C, Cr), lambda b: (0, 0)),
                pl.BlockSpec((1, Cr), lambda b: (0, 0)),
                pl.BlockSpec((Cr, C), lambda b: (0, 0)),
                pl.BlockSpec((1, C), lambda b: (0, 0)),
            ],
            out_specs=pl.BlockSpec((tb, C, HW), lambda b: (b, 0, 0)),
        ),
        compiler_params=pltpu.CompilerParams(
            dimension_semantics=("parallel",),
            vmem_limit_bytes=vmem_limit,
        ),
        cost_estimate=cost,
    )(x_flat, w1, b1, w2, b2)

    return out_flat.reshape(B, C, H, W)


def init_params(key, input_channels, reduction_ratio=16):
    """Deterministic synthetic weights matching nn.Linear shapes.

    PyTorch stores Linear weights as (out, in); we keep them transposed as
    (in, out) so the kernel can do v @ W directly.
    """
    cr = input_channels // reduction_ratio
    k1, k2, k3, k4 = jax.random.split(key, 4)
    w1 = jax.random.normal(k1, (input_channels, cr), jnp.float32) * 0.1
    b1 = jax.random.normal(k2, (1, cr), jnp.float32) * 0.1
    w2 = jax.random.normal(k3, (cr, input_channels), jnp.float32) * 0.1
    b2 = jax.random.normal(k4, (1, input_channels), jnp.float32) * 0.1
    return w1, b1, w2, b2


def _reference(x, w1, b1, w2, b2):
    """Pure-JAX reference mirroring the PyTorch forward."""
    avg = jnp.mean(x, axis=(2, 3))            # (B, C)
    mx = jnp.max(x, axis=(2, 3))              # (B, C)

    def mlp(v):
        h = jax.nn.relu(v @ w1 + b1)
        return h @ w2 + b2

    out = mlp(avg) + mlp(mx)                  # (B, C)
    sig = jax.nn.sigmoid(out)[:, :, None, None]
    return x * sig


if __name__ == "__main__":
    B, C, H, W = 2, 32, 16, 16                # C=32, reduction_ratio=16 -> hidden=2
    key = jax.random.PRNGKey(0)
    kx, kp = jax.random.split(key)
    x = jax.random.normal(kx, (B, C, H, W), jnp.float32)
    w1, b1, w2, b2 = init_params(kp, C, reduction_ratio=16)

    y = channel_attention(x, w1, b1, w2, b2)
    jax.block_until_ready(y)

    y_ref = _reference(x, w1, b1, w2, b2)
    assert y.shape == (B, C, H, W)
    assert jnp.allclose(y, y_ref, atol=1e-5, rtol=1e-5), "mismatch vs reference"

    print("KERNEL_OK")
</pallas_src>

<mosaic_0001>
module attributes {stable_mosaic.version = 11 : i64} {
  func.func @_channel_attention_kernel(%arg0: i32, %arg1: memref<1x32x256xf32, #tpu.memory_space<vmem>>, %arg2: memref<32x2xf32, #tpu.memory_space<vmem>>, %arg3: memref<1x2xf32, #tpu.memory_space<vmem>>, %arg4: memref<2x32xf32, #tpu.memory_space<vmem>>, %arg5: memref<1x32xf32, #tpu.memory_space<vmem>>, %arg6: memref<1x32x256xf32, #tpu.memory_space<vmem>>) attributes {dimension_semantics = [#tpu.dimension_semantics<parallel>], iteration_bounds = array<i64: 2>, scalar_prefetch = 0 : i64, scratch_operands = 0 : i64, tpu.core_type = #tpu.core_type<tc>, window_params = [{transform_indices = @transform_0, window_bounds = array<i64: 1, 32, 256>}, {pipeline_mode = #tpu.pipeline_mode<synchronous>, transform_indices = @transform_1, window_bounds = array<i64: 32, 2>}, {pipeline_mode = #tpu.pipeline_mode<synchronous>, transform_indices = @transform_2, window_bounds = array<i64: 1, 2>}, {pipeline_mode = #tpu.pipeline_mode<synchronous>, transform_indices = @transform_3, window_bounds = array<i64: 2, 32>}, {pipeline_mode = #tpu.pipeline_mode<synchronous>, transform_indices = @transform_4, window_bounds = array<i64: 1, 32>}, {transform_indices = @transform_5, window_bounds = array<i64: 1, 32, 256>}]} {
    %c0 = arith.constant 0 : index
    %c0_0 = arith.constant 0 : index
    %c0_1 = arith.constant 0 : index
    %0 = vector.load %arg1[%c0, %c0_0, %c0_1] : memref<1x32x256xf32, #tpu.memory_space<vmem>>, vector<1x32x256xf32>
    %cst = arith.constant dense<0.000000e+00> : vector<1x32xf32>
    %1 = vector.multi_reduction <add>, %0, %cst [2] : vector<1x32x256xf32> to vector<1x32xf32>
    %cst_2 = arith.constant 3.906250e-03 : f32
    %2 = vector.broadcast %cst_2 : f32 to vector<1x32xf32>
    %3 = arith.mulf %1, %2 : vector<1x32xf32>
    %cst_3 = arith.constant dense<0xFF800000> : vector<1x32xf32>
    %4 = vector.multi_reduction <maximumf>, %0, %cst_3 [2] : vector<1x32x256xf32> to vector<1x32xf32>
    %c0_4 = arith.constant 0 : index
    %c0_5 = arith.constant 0 : index
    %5 = vector.load %arg2[%c0_4, %c0_5] : memref<32x2xf32, #tpu.memory_space<vmem>>, vector<32x2xf32>
    %c0_6 = arith.constant 0 : index
    %c0_7 = arith.constant 0 : index
    %6 = vector.load %arg3[%c0_6, %c0_7] : memref<1x2xf32, #tpu.memory_space<vmem>>, vector<1x2xf32>
    %c0_8 = arith.constant 0 : index
    %c0_9 = arith.constant 0 : index
    %7 = vector.load %arg4[%c0_8, %c0_9] : memref<2x32xf32, #tpu.memory_space<vmem>>, vector<2x32xf32>
    %c0_10 = arith.constant 0 : index
    %c0_11 = arith.constant 0 : index
    %8 = vector.load %arg5[%c0_10, %c0_11] : memref<1x32xf32, #tpu.memory_space<vmem>>, vector<1x32xf32>
    %cst_12 = arith.constant dense<0.000000e+00> : vector<1x2xf32>
    %9 = tpu.matmul %3, %5, %cst_12 {dimension_numbers = #tpu.dot_dimension_numbers<[1], [0], [0], [1], [0, 0, 1, 1], [], []>} : vector<1x32xf32>, vector<32x2xf32>, vector<1x2xf32> -> vector<1x2xf32>
    %10 = arith.addf %9, %6 : vector<1x2xf32>
    %cst_13 = arith.constant 0.000000e+00 : f32
    %11 = vector.broadcast %cst_13 : f32 to vector<1x2xf32>
    %12 = arith.maximumf %10, %11 : vector<1x2xf32>
    %cst_14 = arith.constant dense<0.000000e+00> : vector<1x2xf32>
    %13 = tpu.matmul %4, %5, %cst_14 {dimension_numbers = #tpu.dot_dimension_numbers<[1], [0], [0], [1], [0, 0, 1, 1], [], []>} : vector<1x32xf32>, vector<32x2xf32>, vector<1x2xf32> -> vector<1x2xf32>
    %14 = arith.addf %13, %6 : vector<1x2xf32>
    %cst_15 = arith.constant 0.000000e+00 : f32
    %15 = vector.broadcast %cst_15 : f32 to vector<1x2xf32>
    %16 = arith.maximumf %14, %15 : vector<1x2xf32>
    %17 = arith.addf %12, %16 : vector<1x2xf32>
    %cst_16 = arith.constant dense<0.000000e+00> : vector<1x32xf32>
    %18 = tpu.matmul %17, %7, %cst_16 {dimension_numbers = #tpu.dot_dimension_numbers<[1], [0], [0], [1], [0, 0, 1, 1], [], []>} : vector<1x2xf32>, vector<2x32xf32>, vector<1x32xf32> -> vector<1x32xf32>
    %cst_17 = arith.constant 2.000000e+00 : f32
    %19 = vector.broadcast %cst_17 : f32 to vector<1x32xf32>
    %20 = arith.mulf %19, %8 : vector<1x32xf32>
    %21 = arith.addf %18, %20 : vector<1x32xf32>
    %22 = arith.negf %21 : vector<1x32xf32>
    %23 = math.exp %22 : vector<1x32xf32>
    %cst_18 = arith.constant 1.000000e+00 : f32
    %24 = vector.broadcast %cst_18 : f32 to vector<1x32xf32>
    %25 = arith.addf %24, %23 : vector<1x32xf32>
    %26 = arith.divf %24, %25 : vector<1x32xf32>
    %27 = vector.shape_cast %26 : vector<1x32xf32> to vector<1x32x1xf32>
    %28 = vector.broadcast %27 : vector<1x32x1xf32> to vector<1x32x256xf32>
    %29 = arith.mulf %0, %28 : vector<1x32x256xf32>
    %c0_19 = arith.constant 0 : index
    %c0_20 = arith.constant 0 : index
    %c0_21 = arith.constant 0 : index
    %30 = vector.load %arg6[%c0_19, %c0_20, %c0_21] : memref<1x32x256xf32, #tpu.memory_space<vmem>>, vector<1x32x256xf32>
    tpu.vector_store %arg6[%c0_19, %c0_20, %c0_21], %29 {strides = array<i32>} : memref<1x32x256xf32, #tpu.memory_space<vmem>>, vector<1x32x256xf32>,
    return
  }
  func.func @transform_0(%arg0: i32) -> (i32, i32, i32) {
    %c0_i32 = arith.constant 0 : i32
    %c0_i32_0 = arith.constant 0 : i32
    %c0_i32_1 = arith.constant 0 : i32
    return %arg0, %c0_i32, %c0_i32_0 : i32, i32, i32
  }
  func.func @transform_1(%arg0: i32) -> (i32, i32) {
    %c0_i32 = arith.constant 0 : i32
    %c0_i32_0 = arith.constant 0 : i32
    %c0_i32_1 = arith.constant 0 : i32
    return %c0_i32, %c0_i32_0 : i32, i32
  }
  func.func @transform_2(%arg0: i32) -> (i32, i32) {
    %c0_i32 = arith.constant 0 : i32
    %c0_i32_0 = arith.constant 0 : i32
    %c0_i32_1 = arith.constant 0 : i32
    return %c0_i32, %c0_i32_0 : i32, i32
  }
  func.func @transform_3(%arg0: i32) -> (i32, i32) {
    %c0_i32 = arith.constant 0 : i32
    %c0_i32_0 = arith.constant 0 : i32
    %c0_i32_1 = arith.constant 0 : i32
    return %c0_i32, %c0_i32_0 : i32, i32
  }
  func.func @transform_4(%arg0: i32) -> (i32, i32) {
    %c0_i32 = arith.constant 0 : i32
    %c0_i32_0 = arith.constant 0 : i32
    %c0_i32_1 = arith.constant 0 : i32
    return %c0_i32, %c0_i32_0 : i32, i32
  }
  func.func @transform_5(%arg0: i32) -> (i32, i32, i32) {
    %c0_i32 = arith.constant 0 : i32
    %c0_i32_0 = arith.constant 0 : i32
    %c0_i32_1 = arith.constant 0 : i32
    return %arg0, %c0_i32, %c0_i32_0 : i32, i32, i32
  }
}

</mosaic_0001>

<bundles_post_ra>
// kernel: channel_attention.1
= control target key start
LH: loop header
LB: loop body
LE: loop exit
PB: predicated region body
PF: predicated region fallthrough
CT: control target
= control target key end

     0   :  { %s770_s18 = smov 0   ;;  %s869_s0 = inlined_call_operand.vmem [shape: f32[2,32,256], index: 0, kind: input, shape index: {}]   ;;  %s870_s1 = inlined_call_operand.vmem [shape: f32[32,2], index: 1, kind: input, shape index: {}]   ;;  %s871_s2 = inlined_call_operand.vmem [shape: f32[1,2], index: 2, kind: input, shape index: {}]   ;;  %s872_s3 = inlined_call_operand.vmem [shape: f32[2,32], index: 3, kind: input, shape index: {}]   ;;  %s873_s4 = inlined_call_operand.vmem [shape: f32[1,32], index: 4, kind: input, shape index: {}]   ;;  %s874_s5 = inlined_call_operand.vmem [shape: f32[2,32,256], index: 5, kind: output, shape index: {}]  }
   0x1 LB: > { %s645_s19 = sadd.s32 4294967295, %s735_s18   ;;  %p649_p0 = scmp.ge.s32.totalorder %s735_s18, 1  ;;  %s735_s18 = sphi %s770_s18, %s15_s18  }
   0x2   : > { %p187_p1 = scmp.lt.s32.totalorder %s735_s18, 3 }
   0x4   : > { %p188_p2 = pnand %p649_p0, %p187_p1 }
   0x5   : > { %p215_p3 = scmp.lt.s32.totalorder (!%p188_p2), %s645_s19, 1  ;;  %v261_v16 = vld [vmem:[%s870_s1] sm:$0xff] (!%p188_p2)  ;;  %v262_v17 = vld [vmem:[%s870_s1 + $0x8] sm:$0xff] (!%p188_p2)  ;;  %v737_v19 = vmov (!%p188_p2), 0.0|0.0   ;;  %v263_v20 = vld [vmem:[%s870_s1 + $0x10] sm:$0xff] (!%p188_p2)  ;;  %vm738_vm0 = vmmov (!%p188_p2), 0   ;;  %v272_v24 = vlaneseq (!%p188_p2) }
   0x6   : > { %191 = sbr.rel (%p188_p2) target bundleno = 764 (0x2fc), region = 40  ;;  %v703_v18 = vpack.c.bf16 (!%p188_p2), %v262_v17, %v261_v16  ;;  %702 = vmatprep.subr.bf16.mxu0 (!%p188_p2), %v737_v19  ;;  %708 = vmatprep.subr.bf16.mxu1 (!%p188_p2), %v737_v19  ;;  %v264_v21 = vld [vmem:[%s870_s1 + $0x18] sm:$0xff] (!%p188_p2)  ;;  %v739_v23 = vmov (!%p188_p2), 0.0   ;;  %vm283_vm1 = vcmask (!%p188_p2), 130112   ;;  %vm290_vm2 = vcmask (!%p188_p2), 195712  }
   0x7   : > { %v706_v22 = vpack.c.bf16 (!%p188_p2), %v264_v21, %v263_v20  ;;  %683 = vmatprep.mubr.msk.f32.mxu0 (!%p188_p2), %vm738_vm0, %v739_v23  ;;  %694 = vmatprep.mubr.msk.f32.mxu1 (!%p188_p2), %vm738_vm0, %v739_v23  ;;  %v273_v25 = vand.u32 (!%p188_p2), 127, %v272_v24  ;;  %v832_v26 = vshrl.u32 (!%p188_p2), %v272_v24, 7  ;;  %vm297_vm3 = vcmask (!%p188_p2), 261312   ;;  %v266_v60 = vld [vmem:[%s872_s3] sm:$0x3] (!%p188_p2) }
   0x8   : > { %704 = vmatpush3.bf16.msra.mxu0 (!%p188_p2), %v703_v18  ;;  %710 = vmatpush3.bf16.msra.mxu1 (!%p188_p2), %v703_v18  ;;  %vm299_vm4 = vcmask (!%p188_p2), 261120   ;;  %vm475_vm5 = vcmask (!%p188_p2), 1041408   ;;  %v265_v62 = vld [vmem:[%s871_s2] sm:$0x1] (!%p188_p2)  ;;  %vm471_vm6 = vcmask (!%p188_p2), 15360  }
   0x9   : > { %705 = vmatprep.subr.bf16.mxu0 (!%p188_p2), %v737_v19  ;;  %711 = vmatprep.subr.bf16.mxu1 (!%p188_p2), %v737_v19  ;;  %v292_v28 = vadd.s32 (!%p188_p2), 4294967272, %v273_v25  ;;  %v278_v29 = vadd.s32 (!%p188_p2), 4294967288, %v273_v25  ;;  %v285_v30 = vadd.s32 (!%p188_p2), 4294967280, %v273_v25  ;;  %v276_v32 = vsub.s32 (!%p188_p2), %v273_v25, %v832_v26 }
   0xb   : > { %v295_v34 = vsub.s32 (!%p188_p2), %v292_v28, %v832_v26  ;;  %v281_v36 = vsub.s32 (!%p188_p2), %v278_v29, %v832_v26  ;;  %v288_v37 = vsub.s32 (!%p188_p2), %v285_v30, %v832_v26 }
   0xc   : > { %707 = vmatpush3.bf16.msra.mxu0 (!%p188_p2), %v706_v22  ;;  %713 = vmatpush3.bf16.msra.mxu1 (!%p188_p2), %v706_v22 }
   0xd   : > { %s876_s19 = smov (!%p215_p3, %s645_s19), 1  ;;  %697 = vmatprep.subr.mxu0 %v739_v23 }
   0xe   : > { %s661_s20 = sshll.u32 %s876_s19, 6 }
   0xf   : > { %s219_s23 = scalar_lea.vmem %s869_s0, %s661_s20  ;;  %s224_s15 = scalar_lea.vmem %s874_s5, %s661_s20 }
  0x10   : > { %v786_v0 = vld [vmem:[%s219_s23 + $0x20] sm:$0xff]  ;;  %v788_v1 = vld [vmem:[%s219_s23 + $0x28] sm:$0xff]  ;;  %v796_v5 = vld [vmem:[%s219_s23 + $0x30] sm:$0xff] }
  0x11   : > { %v790_v2 = vld [vmem:[%s219_s23] sm:$0xff]  ;;  %v239_v3 = vadd.f32 %v788_v1, %v786_v0  ;;  %v794_v4 = vld [vmem:[%s219_s23 + $0x8] sm:$0xff]  ;;  %v798_v6 = vld [vmem:[%s219_s23 + $0x38] sm:$0xff]  ;;  %v255_v15 = vmax.f32 %v786_v0, %v788_v1 }
  0x12   : > { %v233_v7 = vadd.f32 %v794_v4, %v790_v2  ;;  %v802_v8 = vld [vmem:[%s219_s23 + $0x10] sm:$0xff]  ;;  %v804_v9 = vld [vmem:[%s219_s23 + $0x18] sm:$0xff]  ;;  %v242_v10 = vadd.f32 %v798_v6, %v796_v5  ;;  %v249_v13 = vmax.f32 %v790_v2, %v794_v4  ;;  %v258_v14 = vmax.f32 %v796_v5, %v798_v6 }
  0x13   : > { %240 = vadd.xlane.f32.xlu1 %v239_v3  ;;  %v236_v11 = vadd.f32 %v804_v9, %v802_v8  ;;  %v252_v12 = vmax.f32 %v802_v8, %v804_v9 }
  0x14   : > { %234 = vadd.xlane.f32.xlu0 %v233_v7 }
  0x17   : > { %243 = vadd.xlane.f32.xlu1 %v242_v10 }
  0x18   : > { %237 = vadd.xlane.f32.xlu0 %v236_v11 }
  0x1b   : > { %253 = vmax.xlane.f32.xlu1 %v252_v12 }
  0x1c   : > { %250 = vmax.xlane.f32.xlu0 %v249_v13 }
  0x1f   : > { %259 = vmax.xlane.f32.xlu1 %v258_v14 }
  0x20   : > { %256 = vmax.xlane.f32.xlu0 %v255_v15  ;;  %v267_v15 = vld [vmem:[%s873_s4] sm:$0x1] }
  0x21   : > { %v470_v16 = vmul.f32 2.0, %v267_v15 }
  0xa0   : > { %v241_v27 = vpop.xlane.xlu1 %240 }
  0xa1   : > { %v235_v31 = vpop.xlane.xlu0 %234  ;;  %v247_v38 = vmul.f32 0.00390625, %v241_v27 }
  0xa2   : > { %v245_v33 = vmul.f32 0.00390625, %v235_v31 }
  0xa3   : > { %v289_v46 = vrot.slane %v247_v38, %v288_v37 }
  0xa4   : > { %v244_v35 = vpop.xlane.xlu1 %243  ;;  %v277_v42 = vrot.slane %v245_v33, %v276_v32 }
  0xa5   : > { %v248_v39 = vmul.f32 0.00390625, %v244_v35  ;;  %v238_v40 = vpop.xlane.xlu0 %237 }
  0xa6   : > { %v246_v41 = vmul.f32 0.00390625, %v238_v40 }
  0xa7   : > { %v296_v43 = vrot.slane %v248_v39, %v295_v34 }
  0xa8   : > { %v282_v44 = vrot.slane %v246_v41, %v281_v36  ;;  %v254_v45 = vpop.xlane.xlu1 %253 }
  0xa9   : > { %v251_v47 = vpop.xlane.xlu0 %250  ;;  %v384_v49 = vrot.slane %v254_v45, %v281_v36 }
  0xaa   : > { %v284_v48 = vsel %vm283_vm1, %v282_v44, %v277_v42  ;;  %v380_v50 = vrot.slane %v251_v47, %v276_v32 }
  0xab   : > { %v291_v51 = vsel %vm290_vm2, %v289_v46, %v284_v48 }
  0xac   : > { %v298_v52 = vsel %vm297_vm3, %v296_v43, %v291_v51  ;;  %v260_v53 = vpop.xlane.xlu1 %259  ;;  %v385_v57 = vsel %vm283_vm1, %v384_v49, %v380_v50 }
  0xad   : > { %684 = vmatmul.mubr.msk.f32.vlgmr.msra.gmra.mrb[0].mxu0 %vm299_vm4, %v298_v52  ;;  %v257_v54 = vpop.xlane.xlu0 %256  ;;  %v394_v55 = vrot.slane %v260_v53, %v295_v34 }
  0xae   : > { %v389_v56 = vrot.slane %v257_v54, %v288_v37  ;;  %699 = vmatprep.mubr.msk.f32.mxu0 %vm738_vm0, %v739_v23  ;;  %698 = vmatpush3.msk.msra.mxu0 %vm475_vm5, %v266_v60  ;;  %v557_v23 = vsub.s32 0, %v832_v26 }
  0xb0   : > { %v390_v58 = vsel %vm290_vm2, %v389_v56, %v385_v57 }
  0xb1   : > { %v395_v59 = vsel %vm297_vm3, %v394_v55, %v390_v58 }
  0xb2   : > { %695 = vmatmul.mubr.msk.f32.vlgmr.msra.gmra.mrb[0].mxu1 %vm299_vm4, %v395_v59 }
 0x180   : > { %v368_v61 = vpop.f32.mrb[0].mxu0 }
 0x181   : > { %v685_v63 = vpop.f32.mrb[1].mxu0  ;;  %v369_v3 = vadd.f32 %v368_v61, %v265_v62 }
 0x183   : > { %v372_v12 = vmax.f32 %v369_v3, 0.0 }
 0x185   : > { %v464_v7 = vpop.f32.mrb[0].mxu1 }
 0x186   : > { %v465_v10 = vadd.f32 %v464_v7, %v265_v62  ;;  %v696_v11 = vpop.f32.mrb[1].mxu1 }
 0x188   : > { %v468_v13 = vmax.f32 %v465_v10, 0.0 }
 0x18a   : > { %v469_v14 = vadd.f32 %v468_v13, %v372_v12 }
 0x18c   : > { %700 = vmatmul.mubr.msk.f32.vlgmr.msra.gmra.mrb[2].mxu0 %vm471_vm6, %v469_v14 }
 0x25f   : > { %v545_v17 = vpop.f32.mrb[2].mxu0 }
 0x260   : > { %v546_v18 = vadd.f32 %v545_v17, %v470_v16  ;;  %v701_v19 = vpop.f32.mrb[3].mxu0 }
 0x262   : > { %v658_v20 = vmul.f32 -1.442695, %v546_v18 }
 0x264   : > { %725 = vpow2.f32 %v658_v20 }
 0x26e   : > { %v726_v21 = vpop.eup %725 }
 0x26f   : > { %v552_v22 = vadd.f32 1.0, %v726_v21 }
 0x271   : > { %727 = vrcp.f32 %v552_v22 }
 0x27b   : > { %v728_v24 = vpop.eup %727 }
 0x27c   : > { %v558_v25 = vrot.slane %v728_v24, %v557_v23 }
 0x27e   : > { %564 = vbcast.lane.b32.xlu1 %v558_v25, 264  ;;  %560 = vbcast.lane.b32.xlu0 %v558_v25, 256 }
 0x282   : > { %568 = vbcast.lane.b32.xlu1 %v558_v25, 272 }
 0x286   : > { %572 = vbcast.lane.b32.xlu1 %v558_v25, 280 }
 0x2f0   : > { %v565_v27 = vpop.permute.xlu1 %564  ;;  %v561_v28 = vpop.permute.xlu0 %560 }
 0x2f1   : > { %v576_v29 = vmul.f32 %v565_v27, %v802_v8  ;;  %v577_v30 = vmul.f32 %v565_v27, %v804_v9  ;;  %v574_v31 = vmul.f32 %v561_v28, %v790_v2  ;;  %v575_v26 = vmul.f32 %v561_v28, %v794_v4 }
 0x2f3   : > { %584 = vst [vmem:[%s224_s15 + $0x10] sm:$0xff] %v576_v29  ;;  %585 = vst [vmem:[%s224_s15 + $0x18] sm:$0xff] %v577_v30 }
 0x2f4   : > { %582 = vst [vmem:[%s224_s15] sm:$0xff] %v574_v31  ;;  %583 = vst [vmem:[%s224_s15 + $0x8] sm:$0xff] %v575_v26  ;;  %v569_v32 = vpop.permute.xlu1 %568 }
 0x2f5   : > { %v578_v33 = vmul.f32 %v569_v32, %v786_v0  ;;  %v579_v34 = vmul.f32 %v569_v32, %v788_v1 }
 0x2f7   : > { %586 = vst [vmem:[%s224_s15 + $0x20] sm:$0xff] %v578_v33  ;;  %587 = vst [vmem:[%s224_s15 + $0x28] sm:$0xff] %v579_v34 }
 0x2f8   : > { %v573_v35 = vpop.permute.xlu1 %572 }
 0x2f9   : > { %v580_v8 = vmul.f32 %v573_v35, %v796_v5  ;;  %v581_v9 = vmul.f32 %v573_v35, %v798_v6 }
 0x2fb   : > { %588 = vst [vmem:[%s224_s15 + $0x30] sm:$0xff] %v580_v8  ;;  %589 = vst [vmem:[%s224_s15 + $0x38] sm:$0xff] %v581_v9 }
 0x2fc PF: > { %s15_s18 = sadd.s32 1, %s735_s18  }
 0x2fd   : > { %p12_p4 = scmp.ge.s32.totalorder %s15_s18, 4  }
 0x2ff   :  { %14 = sbr.rel (!%p12_p4) target bundleno = 1 (0x1), region = 70 }

</bundles_post_ra>
